<compile_context>
chip_gen: v7x
topology: tpu7x:2x2x1
jax: 0.10.0
libtpu: 0.0.40
codegen_flags: <defaults>
</compile_context>

<pallas_src>
import jax
import jax.numpy as jnp
from jax.experimental import pallas as pl
from jax.experimental.pallas import tpu as pltpu

K = 7          # kernel size
STRIDE = 2
PAD = 3
OUT_PAD = 1

MATMUL_DTYPE = jnp.float32   # jnp.bfloat16 on v6e/v7x (then relax check to ~1e-2)
MAX_DOT_DEPTH = 128          # v5e MXU contraction depth


# ----------------------------- weight packing --------------------------------

def _pack_layer(w_t, b, F, dtype):
    """Pack one ConvTranspose1d(k=7, s=2, p=3, op=1) layer for the fused matmul.

    w_t : torch-layout weight (C_in, C_out, K);  b : bias (C_out,)
    F   : number of input phases feeding this layer (1, 2, 4)

    Returns
      Wp : ((F+3)*C_in, 2F*C_out) block-structured weight.  Row block (a+1)
           (input shift a in [-1, F+1]) x column block g (output phase) holds
           the tap weight W_k feeding output phase g from input u[F*r + a]:
             g = 2q   : (a=q+1, k=1) (a=q,   k=3) (a=q-1, k=5)
             g = 2q+1 : (a=q+2, k=0) (a=q+1, k=2) (a=q, k=4) (a=q-1, k=6)
           (zeros elsewhere — the block-sparsity is baked in off the hot path).
      bp : (1, 2F*C_out) bias tiled per output phase (kept f32 for accumulation).
    """
    c_in, c_out, _ = w_t.shape
    n_shift = F + 3
    Wp = jnp.zeros((n_shift * c_in, 2 * F * c_out), jnp.float32)

    def put(Wp, a, g, k):
        r0, c0 = (a + 1) * c_in, g * c_out
        return Wp.at[r0:r0 + c_in, c0:c0 + c_out].set(w_t[:, :, k])

    for q in range(F):
        for a, k in ((q + 1, 1), (q, 3), (q - 1, 5)):        # even output phase 2q
            Wp = put(Wp, a, 2 * q, k)
        for a, k in ((q + 2, 0), (q + 1, 2), (q, 4), (q - 1, 6)):  # odd phase 2q+1
            Wp = put(Wp, a, 2 * q + 1, k)
    bp = jnp.tile(b.astype(jnp.float32).reshape(1, c_out), (1, 2 * F))
    return Wp.astype(dtype), bp


def prepack_params(params, matmul_dtype=MATMUL_DTYPE):
    """One-time packing (off the forward path)."""
    w1, b1 = _pack_layer(params["w1"], params["b1"], 1, matmul_dtype)
    w2, b2 = _pack_layer(params["w3"], params["b3"], 2, matmul_dtype)
    w3, b3 = _pack_layer(params["w4"], params["b4"], 4, matmul_dtype)
    return (w1, b1, w2, b2, w3, b3)


# ------------------------------- kernel body ----------------------------------

def _shift_rows(x, d):
    """y[:, r, :] = x[:, r + d, :]; zeros where r + d falls outside [0, L)."""
    if d == 0:
        return x
    nb, L, c = x.shape
    if abs(d) >= L:
        return jnp.zeros_like(x)
    z = jnp.zeros((nb, abs(d), c), x.dtype)
    if d > 0:
        return jnp.concatenate([x[:, d:, :], z], axis=1)
    return jnp.concatenate([z, x[:, :L + d, :]], axis=1)


def _packed_dot(x2, w):
    """x2 @ w, contraction split into <= MAX_DOT_DEPTH-deep pieces (v5e MXU)."""
    kp = w.shape[0]
    if kp <= MAX_DOT_DEPTH:
        return jnp.dot(x2, w, preferred_element_type=jnp.float32)
    acc = None
    for s in range(0, kp, MAX_DOT_DEPTH):
        e = min(s + MAX_DOT_DEPTH, kp)
        p = jnp.dot(x2[:, s:e], w[s:e, :], preferred_element_type=jnp.float32)
        acc = p if acc is None else acc + p
    return acc


def _layer(x, w_ref, b_ref, F, act):
    """One polyphase ConvTranspose1d(k=7,s=2,p=3,op=1) as ONE block-packed matmul.

    x : (NB, L, F*C_in) phase-major channels-last activations
        (phase f occupies columns [f*C_in, (f+1)*C_in)).
    Returns (NB, L, 2F*C_out) with the same phase-major layout.
    """
    nb, L, fc = x.shape
    c_in = fc // F
    w = w_ref[...]

    # im2col: one shifted slice per distinct tap position a in [-1, F+1]
    # (each built exactly once; element boundaries handled by the batch axis).
    pieces = []
    for a in range(-1, F + 2):
        f, d = a % F, a // F                       # python floor semantics
        ph = x if F == 1 else x[:, :, f * c_in:(f + 1) * c_in]
        pieces.append(_shift_rows(ph, d))
    xcol = jnp.concatenate(pieces, axis=-1)        # (NB, L, (F+3)*C_in)

    x2 = xcol.reshape(nb * L, (F + 3) * c_in).astype(w.dtype)
    y2 = _packed_dot(x2, w) + b_ref[...]           # (NB*L, 2F*C_out), f32 accum
    return act(y2).reshape(nb, L, w.shape[1])


def _decoder_kernel(z_ref, w1_ref, b1_ref, w2_ref, b2_ref, w3_ref, b3_ref, o_ref):
    relu = lambda v: jnp.maximum(v, 0.0)
    x = z_ref[...].astype(jnp.float32)                      # (NB, L0, C0)
    x = _layer(x, w1_ref, b1_ref, 1, relu)                  # (NB, L0, 2*C1)
    # TODO(synk): nn.Dropout(p=0.2) is identity at inference; training-mode
    # stochastic masking is not reproduced here.
    x = _layer(x, w2_ref, b2_ref, 2, relu)                  # (NB, L0, 4*C2)
    x = _layer(x, w3_ref, b3_ref, 4, jax.nn.sigmoid)        # (NB, L0, 8)
    o_ref[...] = x.astype(o_ref.dtype)


# --------------------------------- wrapper ------------------------------------

@jax.jit
def decoder_forward(z_ncl, packed):
    """Fused Pallas Decoder forward.  z_ncl: (N, latent//4, L) like PyTorch NCL."""
    w1, b1, w2, b2, w3, b3 = packed
    n, c0, l0 = z_ncl.shape
    up = STRIDE ** 3                                 # total upsampling factor = 8
    x = jnp.transpose(z_ncl, (0, 2, 1))              # (N, L0, C0) channels-last

    # Block NB elements per grid step: matmul M-dim = NB*L0 (~512 rows target),
    # but keep >= 2 grid steps when n > 1 so both v7x TensorCores get work.
    nb = max(1, min(n, 512 // max(l0, 1)))
    if n > 1:
        nb = min(nb, -(-n // 2))                     # ceil(n/2)
    n_pad = -(-n // nb) * nb
    if n_pad != n:
        x = jnp.pad(x, ((0, n_pad - n), (0, 0), (0, 0)))

    w_spec = lambda w: pl.BlockSpec(w.shape, lambda i: (0, 0))

    out = pl.pallas_call(
        _decoder_kernel,
        out_shape=jax.ShapeDtypeStruct((n_pad, l0, up), jnp.float32),
        grid_spec=pltpu.PrefetchScalarGridSpec(
            num_scalar_prefetch=0,
            grid=(n_pad // nb,),
            in_specs=[
                pl.BlockSpec((nb, l0, c0), lambda i: (i, 0, 0)),
                w_spec(w1), w_spec(b1),
                w_spec(w2), w_spec(b2),
                w_spec(w3), w_spec(b3),
            ],
            out_specs=pl.BlockSpec((nb, l0, up), lambda i: (i, 0, 0)),
        ),
        compiler_params=pltpu.CompilerParams(
            dimension_semantics=("parallel",)),
    )(x, w1, b1, w2, b2, w3, b3)

    out = out[:n]
    # (N, L0, 8) row-major == (N, 8*L0); PyTorch Decoder returns (N, 8*L0, 1).
    return out.reshape(n, up * l0, 1)


# ---------------- pure-JAX reference (for a silent sanity check) --------------

def _ref_convT(x_ncl, w_t, b):
    c_in, c_out, _ = w_t.shape
    wc = jnp.transpose(w_t[:, :, ::-1], (1, 0, 2))   # (C_out, C_in, K)
    y = jax.lax.conv_general_dilated(
        x_ncl, wc,
        window_strides=(1,),
        padding=[(K - 1 - PAD, K - 1 - PAD + OUT_PAD)],
        lhs_dilation=(STRIDE,),
        dimension_numbers=("NCH", "OIH", "NCH"),
    )
    return y + b.reshape(1, c_out, 1)


def decoder_forward_ref(z_ncl, params):
    x = _ref_convT(z_ncl, params["w1"], params["b1"])
    x = jnp.maximum(x, 0.0)
    x = _ref_convT(x, params["w3"], params["b3"])
    x = jnp.maximum(x, 0.0)
    x = _ref_convT(x, params["w4"], params["b4"])
    x = jax.nn.sigmoid(x)
    return jnp.transpose(x, (0, 2, 1))


# -------------------------------------------------------------------------------

def init_params(key, latent_size):
    c1_in, c1_out = latent_size // 4, latent_size // 2
    c3_in, c3_out = latent_size // 2, latent_size
    c4_in, c4_out = latent_size, 1
    ks = jax.random.split(key, 6)
    def w(k, ci, co):
        return jax.random.normal(k, (ci, co, K), jnp.float32) * 0.05
    def b(k, co):
        return jax.random.normal(k, (co,), jnp.float32) * 0.01
    return {
        "w1": w(ks[0], c1_in, c1_out), "b1": b(ks[1], c1_out),
        "w3": w(ks[2], c3_in, c3_out), "b3": b(ks[3], c3_out),
        "w4": w(ks[4], c4_in, c4_out), "b4": b(ks[5], c4_out),
    }


if __name__ == "__main__":
    key = jax.random.PRNGKey(0)
    latent_size = 32          # conv channels: 8 -> 16 -> 32 -> 1
    batch, seq = 2, 8         # z: (N, latent//4, L) = (2, 8, 8)

    k_z, k_p = jax.random.split(key)
    z = jax.random.normal(k_z, (batch, latent_size // 4, seq), jnp.float32)
    params = init_params(k_p, latent_size)
    packed = prepack_params(params)     # one-time weight packing (off the hot path)

    out = decoder_forward(z, packed)
    out = jax.block_until_ready(out)

    ref = decoder_forward_ref(z, params)
    assert out.shape == (batch, 8 * seq, 1), out.shape
    assert jnp.allclose(out, ref, atol=1e-5, rtol=1e-5), "mismatch vs reference"

    print("KERNEL_OK")
</pallas_src>

<mosaic_0001>
module attributes {stable_mosaic.version = 11 : i64} {
  func.func @_decoder_kernel(%arg0: i32, %arg1: memref<1x8x8xf32, #tpu.memory_space<vmem>>, %arg2: memref<32x32xf32, #tpu.memory_space<vmem>>, %arg3: memref<1x32xf32, #tpu.memory_space<vmem>>, %arg4: memref<80x128xf32, #tpu.memory_space<vmem>>, %arg5: memref<1x128xf32, #tpu.memory_space<vmem>>, %arg6: memref<224x8xf32, #tpu.memory_space<vmem>>, %arg7: memref<1x8xf32, #tpu.memory_space<vmem>>, %arg8: memref<1x8x8xf32, #tpu.memory_space<vmem>>) attributes {dimension_semantics = [#tpu.dimension_semantics<parallel>], iteration_bounds = array<i64: 2>, scalar_prefetch = 0 : i64, scratch_operands = 0 : i64, tpu.core_type = #tpu.core_type<tc>, window_params = [{transform_indices = @transform_0, window_bounds = array<i64: 1, 8, 8>}, {pipeline_mode = #tpu.pipeline_mode<synchronous>, transform_indices = @transform_1, window_bounds = array<i64: 32, 32>}, {pipeline_mode = #tpu.pipeline_mode<synchronous>, transform_indices = @transform_2, window_bounds = array<i64: 1, 32>}, {pipeline_mode = #tpu.pipeline_mode<synchronous>, transform_indices = @transform_3, window_bounds = array<i64: 80, 128>}, {pipeline_mode = #tpu.pipeline_mode<synchronous>, transform_indices = @transform_4, window_bounds = array<i64: 1, 128>}, {pipeline_mode = #tpu.pipeline_mode<synchronous>, transform_indices = @transform_5, window_bounds = array<i64: 224, 8>}, {pipeline_mode = #tpu.pipeline_mode<synchronous>, transform_indices = @transform_6, window_bounds = array<i64: 1, 8>}, {transform_indices = @transform_7, window_bounds = array<i64: 1, 8, 8>}]} {
    %c0 = arith.constant 0 : index
    %c0_0 = arith.constant 0 : index
    %c0_1 = arith.constant 0 : index
    %0 = vector.load %arg1[%c0, %c0_0, %c0_1] : memref<1x8x8xf32, #tpu.memory_space<vmem>>, vector<1x8x8xf32>
    %c0_2 = arith.constant 0 : index
    %c0_3 = arith.constant 0 : index
    %1 = vector.load %arg2[%c0_2, %c0_3] : memref<32x32xf32, #tpu.memory_space<vmem>>, vector<32x32xf32>
    %cst = arith.constant 0.000000e+00 : f32
    %2 = vector.broadcast %cst : f32 to vector<1x1x8xf32>
    %3 = vector.extract_strided_slice %0 {offsets = [0, 0, 0], sizes = [1, 7, 8], strides = [1, 1, 1]} : vector<1x8x8xf32> to vector<1x7x8xf32>
    %4 = tpu.concatenate %2, %3 in 1 : vector<1x1x8xf32>, vector<1x7x8xf32> -> vector<1x8x8xf32>
    %cst_4 = arith.constant 0.000000e+00 : f32
    %5 = vector.broadcast %cst_4 : f32 to vector<1x1x8xf32>
    %6 = vector.extract_strided_slice %0 {offsets = [0, 1, 0], sizes = [1, 7, 8], strides = [1, 1, 1]} : vector<1x8x8xf32> to vector<1x7x8xf32>
    %7 = tpu.concatenate %6, %5 in 1 : vector<1x7x8xf32>, vector<1x1x8xf32> -> vector<1x8x8xf32>
    %cst_5 = arith.constant 0.000000e+00 : f32
    %8 = vector.broadcast %cst_5 : f32 to vector<1x2x8xf32>
    %9 = vector.extract_strided_slice %0 {offsets = [0, 2, 0], sizes = [1, 6, 8], strides = [1, 1, 1]} : vector<1x8x8xf32> to vector<1x6x8xf32>
    %10 = tpu.concatenate %9, %8 in 1 : vector<1x6x8xf32>, vector<1x2x8xf32> -> vector<1x8x8xf32>
    %11 = tpu.concatenate %4, %0, %7, %10 in 2 : vector<1x8x8xf32>, vector<1x8x8xf32>, vector<1x8x8xf32>, vector<1x8x8xf32> -> vector<1x8x32xf32>
    %12 = vector.shape_cast %11 : vector<1x8x32xf32> to vector<8x32xf32>
    %cst_6 = arith.constant dense<0.000000e+00> : vector<8x32xf32>
    %13 = tpu.matmul %12, %1, %cst_6 {dimension_numbers = #tpu.dot_dimension_numbers<[1], [0], [0], [1], [0, 0, 1, 1], [], []>} : vector<8x32xf32>, vector<32x32xf32>, vector<8x32xf32> -> vector<8x32xf32>
    %c0_7 = arith.constant 0 : index
    %c0_8 = arith.constant 0 : index
    %14 = vector.load %arg3[%c0_7, %c0_8] : memref<1x32xf32, #tpu.memory_space<vmem>>, vector<1x32xf32>
    %15 = vector.broadcast %14 : vector<1x32xf32> to vector<8x32xf32>
    %16 = arith.addf %13, %15 : vector<8x32xf32>
    %cst_9 = arith.constant 0.000000e+00 : f32
    %17 = vector.broadcast %cst_9 : f32 to vector<8x32xf32>
    %18 = arith.maximumf %16, %17 : vector<8x32xf32>
    %19 = vector.shape_cast %18 : vector<8x32xf32> to vector<1x8x32xf32>
    %c0_10 = arith.constant 0 : index
    %c0_11 = arith.constant 0 : index
    %20 = vector.load %arg4[%c0_10, %c0_11] : memref<80x128xf32, #tpu.memory_space<vmem>>, vector<80x128xf32>
    %21 = vector.extract_strided_slice %19 {offsets = [0, 0, 16], sizes = [1, 8, 16], strides = [1, 1, 1]} : vector<1x8x32xf32> to vector<1x8x16xf32>
    %cst_12 = arith.constant 0.000000e+00 : f32
    %22 = vector.broadcast %cst_12 : f32 to vector<1x1x16xf32>
    %23 = vector.extract_strided_slice %21 {offsets = [0, 0, 0], sizes = [1, 7, 16], strides = [1, 1, 1]} : vector<1x8x16xf32> to vector<1x7x16xf32>
    %24 = tpu.concatenate %22, %23 in 1 : vector<1x1x16xf32>, vector<1x7x16xf32> -> vector<1x8x16xf32>
    %25 = vector.extract_strided_slice %19 {offsets = [0, 0, 0], sizes = [1, 8, 16], strides = [1, 1, 1]} : vector<1x8x32xf32> to vector<1x8x16xf32>
    %26 = vector.extract_strided_slice %19 {offsets = [0, 0, 16], sizes = [1, 8, 16], strides = [1, 1, 1]} : vector<1x8x32xf32> to vector<1x8x16xf32>
    %27 = vector.extract_strided_slice %19 {offsets = [0, 0, 0], sizes = [1, 8, 16], strides = [1, 1, 1]} : vector<1x8x32xf32> to vector<1x8x16xf32>
    %cst_13 = arith.constant 0.000000e+00 : f32
    %28 = vector.broadcast %cst_13 : f32 to vector<1x1x16xf32>
    %29 = vector.extract_strided_slice %27 {offsets = [0, 1, 0], sizes = [1, 7, 16], strides = [1, 1, 1]} : vector<1x8x16xf32> to vector<1x7x16xf32>
    %30 = tpu.concatenate %29, %28 in 1 : vector<1x7x16xf32>, vector<1x1x16xf32> -> vector<1x8x16xf32>
    %31 = vector.extract_strided_slice %19 {offsets = [0, 0, 16], sizes = [1, 8, 16], strides = [1, 1, 1]} : vector<1x8x32xf32> to vector<1x8x16xf32>
    %cst_14 = arith.constant 0.000000e+00 : f32
    %32 = vector.broadcast %cst_14 : f32 to vector<1x1x16xf32>
    %33 = vector.extract_strided_slice %31 {offsets = [0, 1, 0], sizes = [1, 7, 16], strides = [1, 1, 1]} : vector<1x8x16xf32> to vector<1x7x16xf32>
    %34 = tpu.concatenate %33, %32 in 1 : vector<1x7x16xf32>, vector<1x1x16xf32> -> vector<1x8x16xf32>
    %35 = tpu.concatenate %24, %25, %26, %30, %34 in 2 : vector<1x8x16xf32>, vector<1x8x16xf32>, vector<1x8x16xf32>, vector<1x8x16xf32>, vector<1x8x16xf32> -> vector<1x8x80xf32>
    %36 = vector.shape_cast %35 : vector<1x8x80xf32> to vector<8x80xf32>
    %cst_15 = arith.constant dense<0.000000e+00> : vector<8x128xf32>
    %37 = tpu.matmul %36, %20, %cst_15 {dimension_numbers = #tpu.dot_dimension_numbers<[1], [0], [0], [1], [0, 0, 1, 1], [], []>} : vector<8x80xf32>, vector<80x128xf32>, vector<8x128xf32> -> vector<8x128xf32>
    %c0_16 = arith.constant 0 : index
    %c0_17 = arith.constant 0 : index
    %38 = vector.load %arg5[%c0_16, %c0_17] : memref<1x128xf32, #tpu.memory_space<vmem>>, vector<1x128xf32>
    %39 = vector.broadcast %38 : vector<1x128xf32> to vector<8x128xf32>
    %40 = arith.addf %37, %39 : vector<8x128xf32>
    %cst_18 = arith.constant 0.000000e+00 : f32
    %41 = vector.broadcast %cst_18 : f32 to vector<8x128xf32>
    %42 = arith.maximumf %40, %41 : vector<8x128xf32>
    %43 = vector.shape_cast %42 : vector<8x128xf32> to vector<1x8x128xf32>
    %c0_19 = arith.constant 0 : index
    %c0_20 = arith.constant 0 : index
    %44 = vector.load %arg6[%c0_19, %c0_20] : memref<224x8xf32, #tpu.memory_space<vmem>>, vector<224x8xf32>
    %45 = vector.extract_strided_slice %43 {offsets = [0, 0, 96], sizes = [1, 8, 32], strides = [1, 1, 1]} : vector<1x8x128xf32> to vector<1x8x32xf32>
    %cst_21 = arith.constant 0.000000e+00 : f32
    %46 = vector.broadcast %cst_21 : f32 to vector<1x1x32xf32>
    %47 = vector.extract_strided_slice %45 {offsets = [0, 0, 0], sizes = [1, 7, 32], strides = [1, 1, 1]} : vector<1x8x32xf32> to vector<1x7x32xf32>
    %48 = tpu.concatenate %46, %47 in 1 : vector<1x1x32xf32>, vector<1x7x32xf32> -> vector<1x8x32xf32>
    %49 = vector.extract_strided_slice %43 {offsets = [0, 0, 0], sizes = [1, 8, 32], strides = [1, 1, 1]} : vector<1x8x128xf32> to vector<1x8x32xf32>
    %50 = vector.extract_strided_slice %43 {offsets = [0, 0, 32], sizes = [1, 8, 32], strides = [1, 1, 1]} : vector<1x8x128xf32> to vector<1x8x32xf32>
    %51 = vector.extract_strided_slice %43 {offsets = [0, 0, 64], sizes = [1, 8, 32], strides = [1, 1, 1]} : vector<1x8x128xf32> to vector<1x8x32xf32>
    %52 = vector.extract_strided_slice %43 {offsets = [0, 0, 96], sizes = [1, 8, 32], strides = [1, 1, 1]} : vector<1x8x128xf32> to vector<1x8x32xf32>
    %53 = vector.extract_strided_slice %43 {offsets = [0, 0, 0], sizes = [1, 8, 32], strides = [1, 1, 1]} : vector<1x8x128xf32> to vector<1x8x32xf32>
    %cst_22 = arith.constant 0.000000e+00 : f32
    %54 = vector.broadcast %cst_22 : f32 to vector<1x1x32xf32>
    %55 = vector.extract_strided_slice %53 {offsets = [0, 1, 0], sizes = [1, 7, 32], strides = [1, 1, 1]} : vector<1x8x32xf32> to vector<1x7x32xf32>
    %56 = tpu.concatenate %55, %54 in 1 : vector<1x7x32xf32>, vector<1x1x32xf32> -> vector<1x8x32xf32>
    %57 = vector.extract_strided_slice %43 {offsets = [0, 0, 32], sizes = [1, 8, 32], strides = [1, 1, 1]} : vector<1x8x128xf32> to vector<1x8x32xf32>
    %cst_23 = arith.constant 0.000000e+00 : f32
    %58 = vector.broadcast %cst_23 : f32 to vector<1x1x32xf32>
    %59 = vector.extract_strided_slice %57 {offsets = [0, 1, 0], sizes = [1, 7, 32], strides = [1, 1, 1]} : vector<1x8x32xf32> to vector<1x7x32xf32>
    %60 = tpu.concatenate %59, %58 in 1 : vector<1x7x32xf32>, vector<1x1x32xf32> -> vector<1x8x32xf32>
    %61 = tpu.concatenate %48, %49, %50, %51, %52, %56, %60 in 2 : vector<1x8x32xf32>, vector<1x8x32xf32>, vector<1x8x32xf32>, vector<1x8x32xf32>, vector<1x8x32xf32>, vector<1x8x32xf32>, vector<1x8x32xf32> -> vector<1x8x224xf32>
    %62 = vector.shape_cast %61 : vector<1x8x224xf32> to vector<8x224xf32>
    %63 = vector.extract_strided_slice %62 {offsets = [0, 0], sizes = [8, 128], strides = [1, 1]} : vector<8x224xf32> to vector<8x128xf32>
    %64 = vector.extract_strided_slice %44 {offsets = [0, 0], sizes = [128, 8], strides = [1, 1]} : vector<224x8xf32> to vector<128x8xf32>
    %cst_24 = arith.constant dense<0.000000e+00> : vector<8x8xf32>
    %65 = tpu.matmul %63, %64, %cst_24 {dimension_numbers = #tpu.dot_dimension_numbers<[1], [0], [0], [1], [0, 0, 1, 1], [], []>} : vector<8x128xf32>, vector<128x8xf32>, vector<8x8xf32> -> vector<8x8xf32>
    %66 = vector.extract_strided_slice %62 {offsets = [0, 128], sizes = [8, 96], strides = [1, 1]} : vector<8x224xf32> to vector<8x96xf32>
    %67 = vector.extract_strided_slice %44 {offsets = [128, 0], sizes = [96, 8], strides = [1, 1]} : vector<224x8xf32> to vector<96x8xf32>
    %cst_25 = arith.constant dense<0.000000e+00> : vector<8x8xf32>
    %68 = tpu.matmul %66, %67, %cst_25 {dimension_numbers = #tpu.dot_dimension_numbers<[1], [0], [0], [1], [0, 0, 1, 1], [], []>} : vector<8x96xf32>, vector<96x8xf32>, vector<8x8xf32> -> vector<8x8xf32>
    %69 = arith.addf %65, %68 : vector<8x8xf32>
    %c0_26 = arith.constant 0 : index
    %c0_27 = arith.constant 0 : index
    %70 = vector.load %arg7[%c0_26, %c0_27] : memref<1x8xf32, #tpu.memory_space<vmem>>, vector<1x8xf32>
    %71 = vector.broadcast %70 : vector<1x8xf32> to vector<8x8xf32>
    %72 = arith.addf %69, %71 : vector<8x8xf32>
    %73 = arith.negf %72 : vector<8x8xf32>
    %74 = math.exp %73 : vector<8x8xf32>
    %cst_28 = arith.constant 1.000000e+00 : f32
    %75 = vector.broadcast %cst_28 : f32 to vector<8x8xf32>
    %76 = arith.addf %75, %74 : vector<8x8xf32>
    %77 = arith.divf %75, %76 : vector<8x8xf32>
    %78 = vector.shape_cast %77 : vector<8x8xf32> to vector<1x8x8xf32>
    %c0_29 = arith.constant 0 : index
    %c0_30 = arith.constant 0 : index
    %c0_31 = arith.constant 0 : index
    %79 = vector.load %arg8[%c0_29, %c0_30, %c0_31] : memref<1x8x8xf32, #tpu.memory_space<vmem>>, vector<1x8x8xf32>
    tpu.vector_store %arg8[%c0_29, %c0_30, %c0_31], %78 {strides = array<i32>} : memref<1x8x8xf32, #tpu.memory_space<vmem>>, vector<1x8x8xf32>,
    return
  }
  func.func @transform_0(%arg0: i32) -> (i32, i32, i32) {
    %c0_i32 = arith.constant 0 : i32
    %c0_i32_0 = arith.constant 0 : i32
    %c0_i32_1 = arith.constant 0 : i32
    return %arg0, %c0_i32, %c0_i32_0 : i32, i32, i32
  }
  func.func @transform_1(%arg0: i32) -> (i32, i32) {
    %c0_i32 = arith.constant 0 : i32
    %c0_i32_0 = arith.constant 0 : i32
    %c0_i32_1 = arith.constant 0 : i32
    return %c0_i32, %c0_i32_0 : i32, i32
  }
  func.func @transform_2(%arg0: i32) -> (i32, i32) {
    %c0_i32 = arith.constant 0 : i32
    %c0_i32_0 = arith.constant 0 : i32
    %c0_i32_1 = arith.constant 0 : i32
    return %c0_i32, %c0_i32_0 : i32, i32
  }
  func.func @transform_3(%arg0: i32) -> (i32, i32) {
    %c0_i32 = arith.constant 0 : i32
    %c0_i32_0 = arith.constant 0 : i32
    %c0_i32_1 = arith.constant 0 : i32
    return %c0_i32, %c0_i32_0 : i32, i32
  }
  func.func @transform_4(%arg0: i32) -> (i32, i32) {
    %c0_i32 = arith.constant 0 : i32
    %c0_i32_0 = arith.constant 0 : i32
    %c0_i32_1 = arith.constant 0 : i32
    return %c0_i32, %c0_i32_0 : i32, i32
  }
  func.func @transform_5(%arg0: i32) -> (i32, i32) {
    %c0_i32 = arith.constant 0 : i32
    %c0_i32_0 = arith.constant 0 : i32
    %c0_i32_1 = arith.constant 0 : i32
    return %c0_i32, %c0_i32_0 : i32, i32
  }
  func.func @transform_6(%arg0: i32) -> (i32, i32) {
    %c0_i32 = arith.constant 0 : i32
    %c0_i32_0 = arith.constant 0 : i32
    %c0_i32_1 = arith.constant 0 : i32
    return %c0_i32, %c0_i32_0 : i32, i32
  }
  func.func @transform_7(%arg0: i32) -> (i32, i32, i32) {
    %c0_i32 = arith.constant 0 : i32
    %c0_i32_0 = arith.constant 0 : i32
    %c0_i32_1 = arith.constant 0 : i32
    return %arg0, %c0_i32, %c0_i32_0 : i32, i32, i32
  }
}

</mosaic_0001>

<bundles_post_ra>
// kernel: decoder_forward.1
= control target key start
LH: loop header
LB: loop body
LE: loop exit
PB: predicated region body
PF: predicated region fallthrough
CT: control target
= control target key end

     0   :  { %s1065_s24 = smov 0   ;;  %s1272_s0 = inlined_call_operand.vmem [shape: f32[2,8,8], index: 0, kind: input, shape index: {}]   ;;  %s1273_s1 = inlined_call_operand.vmem [shape: f32[32,32], index: 1, kind: input, shape index: {}]   ;;  %s1274_s2 = inlined_call_operand.vmem [shape: f32[1,32], index: 2, kind: input, shape index: {}]   ;;  %s1275_s3 = inlined_call_operand.vmem [shape: f32[80,128], index: 3, kind: input, shape index: {}]   ;;  %s1276_s4 = inlined_call_operand.vmem [shape: f32[1,128], index: 4, kind: input, shape index: {}]   ;;  %s1277_s5 = inlined_call_operand.vmem [shape: f32[224,8], index: 5, kind: input, shape index: {}]   ;;  %s1278_s6 = inlined_call_operand.vmem [shape: f32[1,8], index: 6, kind: input, shape index: {}]   ;;  %s1279_s7 = inlined_call_operand.vmem [shape: f32[2,8,8], index: 7, kind: output, shape index: {}]  }
   0x1 LB: > { %s766_s25 = sadd.s32 4294967295, %s1014_s24   ;;  %p770_p0 = scmp.ge.s32.totalorder %s1014_s24, 1  ;;  %s1014_s24 = sphi %s1065_s24, %s17_s24  }
   0x2   : > { %p236_p1 = scmp.lt.s32.totalorder %s1014_s24, 3 }
   0x4   : > { %p237_p2 = pnand %p770_p0, %p236_p1 }
   0x5   : > { %p266_p3 = scmp.lt.s32.totalorder (!%p237_p2), %s766_s25, 1  ;;  %v275_v0 = vld [vmem:[%s1273_s1] sm:$0xff] (!%p237_p2)  ;;  %v1016_v1 = vmov (!%p237_p2), 0.0|0.0   ;;  %v276_v2 = vld [vmem:[%s1273_s1 + $0x8] sm:$0xff] (!%p237_p2)  ;;  %v277_v3 = vld [vmem:[%s1273_s1 + $0x10] sm:$0xff] (!%p237_p2)  ;;  %vm1017_vm0 = vmmov (!%p237_p2), 0  }
   0x6   : > { %240 = sbr.rel (%p237_p2) target bundleno = 1059 (0x423), region = 48  ;;  %924 = vmatprep.subr.bf16.mxu0 (!%p237_p2), %v1016_v1  ;;  %930 = vmatprep.subr.bf16.mxu1 (!%p237_p2), %v1016_v1  ;;  %v925_v4 = vpack.c.bf16 (!%p237_p2), %v276_v2, %v275_v0  ;;  %v278_v5 = vld [vmem:[%s1273_s1 + $0x18] sm:$0xff] (!%p237_p2)  ;;  %v1018_v7 = vmov (!%p237_p2), 0.0   ;;  %vm286_vm1 = vcmask (!%p237_p2), 1046528   ;;  %vm290_vm2 = vcmask (!%p237_p2), 1045504   ;;  %s1019_s15 = smov (!%p237_p2), 8  }
   0x7   : > { %v928_v6 = vpack.c.bf16 (!%p237_p2), %v278_v5, %v277_v3  ;;  %836 = vmatprep.mubr.msk.f32.mxu0 (!%p237_p2), %vm1017_vm0, %v1018_v7  ;;  %859 = vmatprep.mubr.msk.f32.mxu1 (!%p237_p2), %vm1017_vm0, %v1018_v7  ;;  %s1020_s16 = smov (!%p237_p2), 24   ;;  %s1021_s17 = smov (!%p237_p2), 16   ;;  %vm282_vm3 = vcmask (!%p237_p2), 1040384   ;;  %vm303_vm4 = vcmask (!%p237_p2), 64512   ;;  %vm305_vm5 = vcmask (!%p237_p2), 130048   ;;  %v391_v21 = vld [vmem:[%s1275_s3] sm:$0xff] (!%p237_p2) }
   0x8   : > { %926 = vmatpush3.bf16.msra.mxu0 (!%p237_p2), %v925_v4  ;;  %vm307_vm6 = vcmask (!%p237_p2), 195584   ;;  %vm316_vm7 = vcmask (!%p237_p2), 261120   ;;  %v392_v22 = vld [vmem:[%s1275_s3 + $0x8] sm:$0xff] (!%p237_p2)  ;;  %v393_v23 = vld [vmem:[%s1275_s3 + $0x10] sm:$0xff] (!%p237_p2)  ;;  %v394_v25 = vld [vmem:[%s1275_s3 + $0x18] sm:$0xff] (!%p237_p2)  ;;  %s1022_s21 = smov (!%p237_p2), 112  }
   0x9   : > { %927 = vmatprep.subr.bf16.mxu0 (!%p237_p2), %v1016_v1  ;;  %v931_v24 = vpack.c.bf16 (!%p237_p2), %v392_v22, %v391_v21  ;;  %v934_v26 = vpack.c.bf16 (!%p237_p2), %v394_v25, %v393_v23  ;;  %v395_v27 = vld [vmem:[%s1275_s3 + $0x20] sm:$0xff] (!%p237_p2)  ;;  %v396_v28 = vld [vmem:[%s1275_s3 + $0x28] sm:$0xff] (!%p237_p2)  ;;  %v397_v30 = vld [vmem:[%s1275_s3 + $0x30] sm:$0xff] (!%p237_p2)  ;;  %s1023_s22 = smov (!%p237_p2), 48   ;;  %vm419_vm8 = vcmask (!%p237_p2), 392192   ;;  %vm421_vm9 = vcmask (!%p237_p2), 523264  }
   0xa   : > { %v937_v29 = vpack.c.bf16 (!%p237_p2), %v396_v28, %v395_v27  ;;  %v398_v31 = vld [vmem:[%s1275_s3 + $0x38] sm:$0xff] (!%p237_p2)  ;;  %v399_v33 = vld [vmem:[%s1275_s3 + $0x40] sm:$0xff] (!%p237_p2)  ;;  %v400_v34 = vld [vmem:[%s1275_s3 + $0x48] sm:$0xff] (!%p237_p2)  ;;  %vm430_vm10 = vcmask (!%p237_p2), 654336   ;;  %vm551_vm11 = vcmask (!%p237_p2), 785408  }
   0xb   : > { %932 = vmatpush3.bf16.msra.mxu1 (!%p237_p2), %v931_v24  ;;  %v940_v32 = vpack.c.bf16 (!%p237_p2), %v398_v31, %v397_v30  ;;  %v943_v35 = vpack.c.bf16 (!%p237_p2), %v400_v34, %v399_v33  ;;  %v773_v36 = vld [vmem:[%s1274_s2] ss:$0 sm:$0xff] (!%p237_p2)  ;;  %v506_v53 = vld [vmem:[%s1277_s5 + $0x8] sm:$0xff] (!%p237_p2)  ;;  %v507_v54 = vld [vmem:[%s1277_s5 + $0x10] sm:$0xff] (!%p237_p2) }
   0xc   : > { %929 = vmatpush3.bf16.msra.mxu0 (!%p237_p2), %v928_v6  ;;  %933 = vmatprep.subr.bf16.mxu1 (!%p237_p2), %v1016_v1  ;;  %v505_v52 = vld [vmem:[%s1277_s5] sm:$0xff] (!%p237_p2)  ;;  %v508_v56 = vld [vmem:[%s1277_s5 + $0x18] sm:$0xff] (!%p237_p2)  ;;  %v522_v58 = vld [vmem:[%s1277_s5 + $0x88] sm:$0xff] (!%p237_p2) }
   0xd   : > { %s1281_s25 = smov (!%p266_p3, %s766_s25), 1  ;;  %945 = vmatprep.subr.bf16.mxu0 %v1016_v1  ;;  %v964_v55 = vpack.c.bf16 %v506_v53, %v505_v52  ;;  %v521_v57 = vld [vmem:[%s1277_s5 + $0x80] sm:$0xff]  ;;  %v967_v59 = vpack.c.bf16 %v508_v56, %v507_v54  ;;  %v523_v61 = vld [vmem:[%s1277_s5 + $0x90] sm:$0xff]  ;;  %v524_v62 = vld [vmem:[%s1277_s5 + $0x98] sm:$0xff] }
   0xe   : > { %s771_s11 = sshll.u32 %s1281_s25, 3  ;;  %v946_v60 = vpack.c.bf16 %v522_v58, %v521_v57  ;;  %v509_v63 = vld [vmem:[%s1277_s5 + $0x20] sm:$0xff]  ;;  %v510_v0 = vld [vmem:[%s1277_s5 + $0x28] sm:$0xff]  ;;  %v949_v2 = vpack.c.bf16 %v524_v62, %v523_v61  ;;  %v511_v6 = vld [vmem:[%s1277_s5 + $0x30] sm:$0xff] }
   0xf   : > { %s269_s14 = scalar_lea.vmem %s1272_s0, %s771_s11  ;;  %935 = vmatpush3.bf16.msra.mxu1 %v934_v26  ;;  %v525_v3 = vld [vmem:[%s1277_s5 + $0xa0] sm:$0xff]  ;;  %v526_v4 = vld [vmem:[%s1277_s5 + $0xa8] sm:$0xff]  ;;  %v970_v5 = vpack.c.bf16 %v510_v0, %v509_v63  ;;  %v519_v25 = vld [vmem:[%s1277_s5 + $0x70] sm:$0xff]  ;;  %s273_s27 = scalar_lea.vmem %s1279_s7, %s771_s11 }
  0x10   : > { %v274_v8 = vld [vmem:[%s269_s14] sm:$0xff]  ;;  %936 = vmatprep.subr.bf16.mxu1 %v1016_v1  ;;  %v530_v23 = vld [vmem:[%s1277_s5 + $0xc8] sm:$0xff]  ;;  %v520_v26 = vld [vmem:[%s1277_s5 + $0x78] sm:$0xff] }
  0x11   : > { %292 = vrot.lane.b32.xlu0 %v274_v8, %s1019_s15  ;;  %v284_v9 = vrot.slane %v274_v8, 1  ;;  %v288_v10 = vrot.slane %v274_v8, 2  ;;  %v280_v13 = vrot.slane %v274_v8, 7  ;;  %v952_v8 = vpack.c.bf16 %v526_v4, %v525_v3  ;;  %v529_v22 = vld [vmem:[%s1277_s5 + $0xc0] sm:$0xff]  ;;  %v531_v28 = vld [vmem:[%s1277_s5 + $0xd0] sm:$0xff] }
  0x12   : > { %v958_v24 = vpack.c.bf16 %v530_v23, %v529_v22  ;;  %v985_v27 = vpack.c.bf16 %v520_v26, %v519_v25  ;;  %v775_v31 = vld [vmem:[%s1276_s4] ss:$0 sm:$0xff] }
  0x13   : > { %v287_v11 = vsel %vm286_vm1, %v284_v9, 0.0  ;;  %v291_v12 = vsel %vm290_vm2, %v288_v10, 0.0  ;;  %v283_v15 = vsel %vm282_vm3, 0.0, %v280_v13  ;;  %938 = vmatpush3.bf16.msra.mxu1 %v937_v29  ;;  %v527_v9 = vld [vmem:[%s1277_s5 + $0xb0] sm:$0xff]  ;;  %v528_v10 = vld [vmem:[%s1277_s5 + $0xb8] sm:$0xff]  ;;  %v514_v13 = vld [vmem:[%s1277_s5 + $0x48] sm:$0xff] }
  0x14   : > { %300 = vrot.lane.b32.xlu1 %v291_v12, %s1020_s16  ;;  %939 = vmatprep.subr.bf16.mxu1 %v1016_v1  ;;  %v513_v12 = vld [vmem:[%s1277_s5 + $0x40] sm:$0xff]  ;;  %v532_v29 = vld [vmem:[%s1277_s5 + $0xd8] sm:$0xff] }
  0x15   : > { %296 = vrot.lane.b32.xlu0 %v287_v11, %s1021_s17  ;;  %v961_v30 = vpack.c.bf16 %v532_v29, %v531_v28 }
  0x17   : > { %941 = vmatpush3.bf16.msra.mxu1 %v940_v32 }
  0x18   : > { %942 = vmatprep.subr.bf16.mxu1 %v1016_v1 }
  0x1b   : > { %944 = vmatpush3.bf16.msra.mxu1 %v943_v35 }
  0x1c   : > { %963 = vmatprep.subr.bf16.mxu1 %v1016_v1 }
  0x83   : > { %v293_v14 = vpop.permute.xlu0 %292 }
  0x84   : > { %v304_v17 = vsel %vm303_vm4, %v283_v15, %v293_v14  ;;  %v955_v14 = vpack.c.bf16 %v528_v10, %v527_v9  ;;  %v976_v15 = vpack.c.bf16 %v514_v13, %v513_v12 }
  0x86   : > { %v301_v16 = vpop.permute.xlu1 %300 }
  0x87   : > { %v297_v18 = vpop.permute.xlu0 %296 }
  0x88   : > { %v306_v19 = vsel %vm305_vm5, %v304_v17, %v297_v18  ;;  %v516_v17 = vld [vmem:[%s1277_s5 + $0x58] sm:$0xff] }
  0x89   : > { %v308_v20 = vsel %vm307_vm6, %v306_v19, %v301_v16  ;;  %v515_v16 = vld [vmem:[%s1277_s5 + $0x50] sm:$0xff]  ;;  %v517_v19 = vld [vmem:[%s1277_s5 + $0x60] sm:$0xff] }
  0x8a   : > { %837 = vmatmul.mubr.msk.f32.vlgmr.msra.gmra.mrb[0].mxu0 %vm316_vm7, %v308_v20  ;;  %v979_v18 = vpack.c.bf16 %v516_v17, %v515_v16  ;;  %v518_v20 = vld [vmem:[%s1277_s5 + $0x68] sm:$0xff] }
  0x8b   : > { %886 = vmatprep.mubr.msk.f32.mxu0 %vm1017_vm0, %v1018_v7  ;;  %947 = vmatpush3.bf16.msra.mxu0 %v946_v60  ;;  %v982_v21 = vpack.c.bf16 %v518_v20, %v517_v19 }
  0x8c   : > { %948 = vmatprep.subr.bf16.mxu0 %v1016_v1 }
  0x8f   : > { %950 = vmatpush3.bf16.msra.mxu0 %v949_v2 }
  0x90   : > { %951 = vmatprep.subr.bf16.mxu0 %v1016_v1 }
  0x93   : > { %953 = vmatpush3.bf16.msra.mxu0 %v952_v8 }
  0x94   : > { %954 = vmatprep.subr.bf16.mxu0 %v1016_v1 }
  0x97   : > { %956 = vmatpush3.bf16.msra.mxu0 %v955_v14 }
  0x98   : > { %957 = vmatprep.subr.bf16.mxu0 %v1016_v1 }
  0x9b   : > { %959 = vmatpush3.bf16.msra.mxu0 %v958_v24 }
  0x9c   : > { %960 = vmatprep.subr.bf16.mxu0 %v1016_v1 }
  0x9f   : > { %962 = vmatpush3.bf16.msra.mxu0 %v961_v30 }
 0x15d   : > { %v386_v37 = vpop.f32.mrb[0].mxu0 }
 0x15e   : > { %v387_v38 = vadd.f32 %v773_v36, %v386_v37  ;;  %v838_v39 = vpop.f32.mrb[1].mxu0 }
 0x160   : > { %v390_v40 = vmax.f32 %v387_v38, 0.0 }
 0x162   : > { %410 = vrot.lane.b32.xlu0 %v390_v40, %s1021_s17  ;;  %v402_v41 = vrot.slane %v390_v40, 7  ;;  %v407_v42 = vrot.slane %v390_v40, 1 }
 0x164   : > { %403 = vrot.lane.b32.xlu1 %v402_v41, %s1022_s21  ;;  %v409_v43 = vsel %vm286_vm1, %v407_v42, 0.0  ;;  %s1024_s21 = smov 32  }
 0x168   : > { %414 = vrot.lane.b32.xlu1 %v409_v43, %s1023_s22 }
 0x1d4   : > { %v411_v45 = vpop.permute.xlu0 %410 }
 0x1d6   : > { %v404_v44 = vpop.permute.xlu1 %403 }
 0x1d7   : > { %v406_v46 = vsel %vm282_vm3, 0.0, %v404_v44 }
 0x1d8   : > { %v417_v47 = vsel %vm305_vm5, %v406_v46, %v411_v45 }
 0x1d9   : > { %v418_v48 = vsel %vm316_vm7, %v417_v47, %v411_v45 }
 0x1da   : > { %v415_v49 = vpop.permute.xlu1 %414 }
 0x1db   : > { %v420_v50 = vsel %vm419_vm8, %v418_v48, %v415_v49 }
 0x1dc   : > { %v422_v51 = vsel %vm421_vm9, %v420_v50, %v415_v49  ;;  %v778_v50 = vld [vmem:[%s1278_s6] ss:$0 sm:$0xff] }
 0x1dd   : > { %860 = vmatmul.mubr.msk.f32.vlgmr.msra.gmra.mrb[0].mxu1 %vm430_vm10, %v422_v51 }
 0x1de   : > { %921 = vmatprep.mubr.msk.f32.mxu1 %vm1017_vm0, %v1018_v7  ;;  %965 = vmatpush3.bf16.msra.mxu1 %v964_v55  ;;  %v512_v7 = vld [vmem:[%s1277_s5 + $0x38] sm:$0xff] }
 0x1df   : > { %966 = vmatprep.subr.bf16.mxu1 %v1016_v1  ;;  %v973_v11 = vpack.c.bf16 %v512_v7, %v511_v6 }
 0x1e2   : > { %968 = vmatpush3.bf16.msra.mxu1 %v967_v59 }
 0x1e3   : > { %969 = vmatprep.subr.bf16.mxu1 %v1016_v1 }
 0x1e6   : > { %971 = vmatpush3.bf16.msra.mxu1 %v970_v5 }
 0x1e7   : > { %972 = vmatprep.subr.bf16.mxu1 %v1016_v1 }
 0x1ea   : > { %974 = vmatpush3.bf16.msra.mxu1 %v973_v11 }
 0x1eb   : > { %975 = vmatprep.subr.bf16.mxu1 %v1016_v1 }
 0x1ee   : > { %977 = vmatpush3.bf16.msra.mxu1 %v976_v15 }
 0x1ef   : > { %978 = vmatprep.subr.bf16.mxu1 %v1016_v1 }
 0x1f2   : > { %980 = vmatpush3.bf16.msra.mxu1 %v979_v18 }
 0x1f3   : > { %981 = vmatprep.subr.bf16.mxu1 %v1016_v1 }
 0x1f6   : > { %983 = vmatpush3.bf16.msra.mxu1 %v982_v21 }
 0x1f7   : > { %984 = vmatprep.subr.bf16.mxu1 %v1016_v1 }
 0x1fa   : > { %986 = vmatpush3.bf16.msra.mxu1 %v985_v27 }
 0x2b0   : > { %v500_v32 = vpop.f32.mrb[0].mxu1 }
 0x2b1   : > { %v501_v33 = vadd.f32 %v775_v31, %v500_v32  ;;  %v861_v34 = vpop.f32.mrb[1].mxu1 }
 0x2b3   : > { %v504_v35 = vmax.f32 %v501_v33, 0.0 }
 0x2b5   : > { %542 = vrot.lane.b32.xlu1 %v504_v35, %s1024_s21  ;;  %v534_v1 = vrot.slane %v504_v35, 7  ;;  %v539_v36 = vrot.slane %v504_v35, 1 }
 0x2b7   : > { %535 = vrot.lane.b32.xlu0 %v534_v1, %s1024_s21  ;;  %v541_v37 = vsel %vm286_vm1, %v539_v36, 0.0 }
 0x2bb   : > { %546 = vrot.lane.b32.xlu0 %v541_v37, %s1024_s21 }
 0x327   : > { %v543_v39 = vpop.permute.xlu1 %542 }
 0x329   : > { %v536_v38 = vpop.permute.xlu0 %535 }
 0x32a   : > { %v538_v40 = vsel %vm282_vm3, 0.0, %v536_v38 }
 0x32b   : > { %v549_v41 = vsel %vm316_vm7, %v538_v40, %v543_v39 }
 0x32c   : > { %v550_v42 = vsel %vm421_vm9, %v549_v41, %v543_v39 }
 0x32d   : > { %v547_v43 = vpop.permute.xlu0 %546  ;;  %v552_v44 = vsel %vm551_vm11, %v550_v42, %v543_v39 }
 0x32e   : > { %v553_v45 = vsel %vm316_vm7, %v543_v39, %v547_v43  ;;  %922 = vmatmul.mubr.f32.vlgmr.msra.gmra.mrb[2].mxu1 %v552_v44 }
 0x32f   : > { %v554_v46 = vsel %vm421_vm9, %v553_v45, %v547_v43 }
 0x330   : > { %887 = vmatmul.mubr.msk.f32.vlgmr.msra.gmra.mrb[2].mxu0 %vm551_vm11, %v554_v46 }
 0x401   : > { %v694_v47 = vpop.f32.mrb[2].mxu1 }
 0x402   : > { %v923_v48 = vpop.f32.mrb[3].mxu1 }
 0x403   : > { %v624_v49 = vpop.f32.mrb[2].mxu0 }
 0x404   : > { %v695_v51 = vadd.f32 %v694_v47, %v624_v49  ;;  %v888_v52 = vpop.f32.mrb[3].mxu0 }
 0x406   : > { %v705_v53 = vadd.f32 %v778_v50, %v695_v51 }
 0x408   : > { %v779_v54 = vmul.f32 -1.442695, %v705_v53 }
 0x40a   : > { %1004 = vpow2.f32 %v779_v54 }
 0x414   : > { %v1005_v55 = vpop.eup %1004 }
 0x415   : > { %v709_v56 = vadd.f32 1.0, %v1005_v55 }
 0x417   : > { %1006 = vrcp.f32 %v709_v56 }
 0x421   : > { %v1007_v57 = vpop.eup %1006 }
 0x422   : > { %712 = vst.msk [vmem:[%s273_s27] sm:$0xff] %vm303_vm4, %v1007_v57 }
 0x423 PF: > { %s17_s24 = sadd.s32 1, %s1014_s24  }
 0x424   : > { %p14_p4 = scmp.ge.s32.totalorder %s17_s24, 4  }
 0x426   :  { %16 = sbr.rel (!%p14_p4) target bundleno = 1 (0x1), region = 78 }

</bundles_post_ra>
